<compile_context>
chip_gen: v6e
topology: v6e:2x2x1
jax: 0.10.0
libtpu: 0.0.40
codegen_flags: <defaults>
</compile_context>

<pallas_src>
import functools

import jax
import jax.numpy as jnp
from jax.experimental import pallas as pl
from jax.experimental.pallas import tpu as pltpu

_HALF_LOG_2PI = 0.9189385332046727  # 0.5 * log(2*pi)
_TB_MAX = 4096  # max batch-tile rows; per-step footprint stays far below the
                # scoped VMEM limit on v5e/v6e and v7x (32 MiB scoped / 64 MiB).


def _round_up(n: int, m: int) -> int:
    return ((n + m - 1) // m) * m


def _policy_kernel(x_ref, w1_ref, b1_ref, wmu_ref, bmu_ref, wstd_ref, bstd_ref,
                   eps_ref, pi_ref, logpi_ref, *, action_bound):
    # fc1 + ReLU (bf16 MXU operands, f32 accumulate).
    x = x_ref[...].astype(jnp.bfloat16)
    h = jnp.dot(x, w1_ref[...], preferred_element_type=jnp.float32) + b1_ref[...]
    h = jnp.maximum(h, 0.0).astype(jnp.bfloat16)

    # Narrow (N == action_dim) head matmuls: no padded lanes, so the
    # transcendentals below touch only valid elements.
    mu = jnp.dot(h, wmu_ref[...], preferred_element_type=jnp.float32) + bmu_ref[...]
    std = jax.nn.softplus(
        jnp.dot(h, wstd_ref[...], preferred_element_type=jnp.float32) + bstd_ref[...])

    # Reparameterized sample: x_t = mu + std * eps, eps ~ N(0, 1).
    eps = eps_ref[...]
    x_t = mu + std * eps
    pi = jnp.tanh(x_t)

    # Normal(mu, std).log_prob(x_t); since (x_t - mu) == std * eps exactly the
    # quadratic term collapses to -0.5 * eps^2 (no divide, no variance).
    log_pi = -0.5 * (eps * eps) - jnp.log(std) - _HALF_LOG_2PI
    # tanh squash correction (matches the PyTorch module's epsilon form).
    log_pi = log_pi - jnp.log(1.0 - pi * pi + 1e-07)

    pi_ref[...] = pi * action_bound
    logpi_ref[...] = log_pi


def pack_params(w1, b1, w_mu, b_mu, w_std, b_std):
    """PyTorch layout in: w [out, in], b [out]. Returns kernel operands:
    transposed bf16 weights and f32 row-vector biases. No lane padding."""
    w1_t = jnp.asarray(w1, jnp.float32).T.astype(jnp.bfloat16)       # [obs, H]
    b1_r = jnp.asarray(b1, jnp.float32).reshape(1, -1)               # [1, H]
    wmu_t = jnp.asarray(w_mu, jnp.float32).T.astype(jnp.bfloat16)    # [H, A]
    bmu_r = jnp.asarray(b_mu, jnp.float32).reshape(1, -1)            # [1, A]
    wstd_t = jnp.asarray(w_std, jnp.float32).T.astype(jnp.bfloat16)  # [H, A]
    bstd_r = jnp.asarray(b_std, jnp.float32).reshape(1, -1)          # [1, A]
    return (w1_t, b1_r, wmu_t, bmu_r, wstd_t, bstd_r)


def _batch_tiling(batch: int):
    """Return (tb, n_blocks, pad_rows).

    tb is a multiple of 8 (sublane rule) and never exceeds the (padded) batch;
    for batch >= 32 we force >= 2 grid steps so the "parallel" axis can shard
    across both v7x TensorCores. Ragged last tiles are handled by Pallas
    boundary masking (no wrapper-side jnp.pad copy); only batches < 8 get a
    tiny one-time pad to 8 rows."""
    if batch < 8:
        return 8, 1, 8 - batch
    if batch < 32:
        n_steps = pl.cdiv(batch, 8)
    else:
        n_steps = max(2, pl.cdiv(batch, _TB_MAX))
    tb = min(_TB_MAX, _round_up(pl.cdiv(batch, n_steps), 8))
    return tb, pl.cdiv(batch, tb), 0


def policy_net_forward(x, packed_params, eps, action_bound):
    """x: [B, obs_dim] f32, eps: [B, action_dim] f32 (standard normal draws).
    Returns (pi, log_pi), each [B, action_dim] f32 (matches PolicyNet.forward)."""
    w1, b1, w_mu, b_mu, w_std, b_std = packed_params
    B, obs_dim = x.shape
    H = w1.shape[1]
    A = w_mu.shape[1]
    assert eps.shape == (B, A)

    tb, n_blocks, pad_rows = _batch_tiling(B)
    if pad_rows:  # only for B < 8; at most 7 extra rows
        x = jnp.pad(x, ((0, pad_rows), (0, 0)))
        eps = jnp.pad(eps, ((0, pad_rows), (0, 0)))
    bp = B + pad_rows

    kernel = functools.partial(_policy_kernel, action_bound=float(action_bound))

    def tiled(feat):  # batch-tiled operands
        return pl.BlockSpec((tb, feat), lambda i: (i, 0))

    def resident(shape):  # weights/biases: VMEM-resident across grid steps
        return pl.BlockSpec(shape, lambda i: (0, 0))

    pi, log_pi = pl.pallas_call(
        kernel,
        grid=(n_blocks,),
        out_shape=(
            jax.ShapeDtypeStruct((bp, A), jnp.float32),
            jax.ShapeDtypeStruct((bp, A), jnp.float32),
        ),
        in_specs=[
            tiled(obs_dim),          # x
            resident(w1.shape),      # w1    [obs, H] bf16
            resident(b1.shape),      # b1    [1, H]
            resident(w_mu.shape),    # w_mu  [H, A] bf16
            resident(b_mu.shape),    # b_mu  [1, A]
            resident(w_std.shape),   # w_std [H, A] bf16
            resident(b_std.shape),   # b_std [1, A]
            tiled(A),                # eps
        ],
        out_specs=(
            tiled(A),                # pi
            tiled(A),                # log_pi
        ),
        compiler_params=pltpu.CompilerParams(
            dimension_semantics=("parallel",)),
    )(x, w1, b1, w_mu, b_mu, w_std, b_std, eps)

    if pad_rows:
        pi, log_pi = pi[:B], log_pi[:B]
    return pi, log_pi


def init_torch_linear(key, fan_out, fan_in):
    """PyTorch nn.Linear default init: uniform(-1/sqrt(fan_in), 1/sqrt(fan_in))."""
    kw, kb = jax.random.split(key)
    bound = 1.0 / float(fan_in) ** 0.5
    w = jax.random.uniform(kw, (fan_out, fan_in), jnp.float32, -bound, bound)
    b = jax.random.uniform(kb, (fan_out,), jnp.float32, -bound, bound)
    return w, b


def _check(pi, log_pi, x, eps, w1, b1, w_mu, b_mu, w_std, b_std, action_bound):
    # reference 1: identical math (bf16 matmul operands), tight tolerance
    w1b = jnp.asarray(w1, jnp.float32).T.astype(jnp.bfloat16)
    wmub = jnp.asarray(w_mu, jnp.float32).T.astype(jnp.bfloat16)
    wstdb = jnp.asarray(w_std, jnp.float32).T.astype(jnp.bfloat16)
    h = jnp.maximum(
        jnp.dot(x.astype(jnp.bfloat16), w1b, preferred_element_type=jnp.float32)
        + b1[None, :], 0.0)
    hb = h.astype(jnp.bfloat16)
    mu = jnp.dot(hb, wmub, preferred_element_type=jnp.float32) + b_mu[None, :]
    std = jax.nn.softplus(
        jnp.dot(hb, wstdb, preferred_element_type=jnp.float32) + b_std[None, :])
    x_t = mu + std * eps
    pi_r = jnp.tanh(x_t)
    logp_r = (-((x_t - mu) ** 2) / (2.0 * std * std) - jnp.log(std)
              - 0.5 * jnp.log(2.0 * jnp.pi))
    logp_r = logp_r - jnp.log(1.0 - pi_r ** 2 + 1e-07)
    assert jnp.allclose(pi, pi_r * action_bound, atol=1e-3, rtol=1e-3), "pi mismatch (bf16 ref)"
    assert jnp.allclose(log_pi, logp_r, atol=1e-3, rtol=1e-3), "log_pi mismatch (bf16 ref)"

    # reference 2: full-f32 module semantics, looser tolerance (bf16 weight quant)
    hf = jnp.maximum(x @ w1.T + b1, 0.0)
    muf = hf @ w_mu.T + b_mu
    stdf = jax.nn.softplus(hf @ w_std.T + b_std)
    xtf = muf + stdf * eps
    pif = jnp.tanh(xtf)
    logpf = (-(eps ** 2) / 2.0 - jnp.log(stdf) - 0.5 * jnp.log(2.0 * jnp.pi)
             - jnp.log(1.0 - pif ** 2 + 1e-07))
    assert jnp.allclose(pi, pif * action_bound, atol=5e-2, rtol=5e-2), "pi mismatch (f32 ref)"
    assert jnp.allclose(log_pi, logpf, atol=5e-2, rtol=5e-2), "log_pi mismatch (f32 ref)"


if __name__ == "__main__":
    obs_dim, hidden_dim, action_dim = 16, 32, 8
    action_bound = 2.0

    key = jax.random.PRNGKey(0)
    k1, k2, k3, kx1, ke1, kx2, ke2 = jax.random.split(key, 7)

    w1, b1 = init_torch_linear(k1, hidden_dim, obs_dim)
    w_mu, b_mu = init_torch_linear(k2, action_dim, hidden_dim)
    w_std, b_std = init_torch_linear(k3, action_dim, hidden_dim)
    packed = pack_params(w1, b1, w_mu, b_mu, w_std, b_std)

    # batch=2: single-tile grid; batch=112: 2-step "parallel" grid (v7x path).
    for batch, kx, ke in ((2, kx1, ke1), (112, kx2, ke2)):
        x = jax.random.normal(kx, (batch, obs_dim), jnp.float32)
        eps = jax.random.normal(ke, (batch, action_dim), jnp.float32)

        pi, log_pi = policy_net_forward(x, packed, eps, action_bound)
        jax.block_until_ready((pi, log_pi))

        assert pi.shape == (batch, action_dim)
        assert log_pi.shape == (batch, action_dim)
        _check(pi, log_pi, x, eps, w1, b1, w_mu, b_mu, w_std, b_std, action_bound)

    print("KERNEL_OK")
</pallas_src>

<mosaic_0001>
module attributes {stable_mosaic.version = 11 : i64} {
  func.func @_policy_kernel(%arg0: i32, %arg1: memref<8x16xf32, #tpu.memory_space<vmem>>, %arg2: memref<16x32xbf16, #tpu.memory_space<vmem>>, %arg3: memref<1x32xf32, #tpu.memory_space<vmem>>, %arg4: memref<32x8xbf16, #tpu.memory_space<vmem>>, %arg5: memref<1x8xf32, #tpu.memory_space<vmem>>, %arg6: memref<32x8xbf16, #tpu.memory_space<vmem>>, %arg7: memref<1x8xf32, #tpu.memory_space<vmem>>, %arg8: memref<8x8xf32, #tpu.memory_space<vmem>>, %arg9: memref<8x8xf32, #tpu.memory_space<vmem>>, %arg10: memref<8x8xf32, #tpu.memory_space<vmem>>) attributes {dimension_semantics = [#tpu.dimension_semantics<parallel>], iteration_bounds = array<i64: 1>, scalar_prefetch = 0 : i64, scratch_operands = 0 : i64, tpu.core_type = #tpu.core_type<tc>, window_params = [{transform_indices = @transform_0, window_bounds = array<i64: 8, 16>}, {pipeline_mode = #tpu.pipeline_mode<synchronous>, transform_indices = @transform_1, window_bounds = array<i64: 16, 32>}, {pipeline_mode = #tpu.pipeline_mode<synchronous>, transform_indices = @transform_2, window_bounds = array<i64: 1, 32>}, {pipeline_mode = #tpu.pipeline_mode<synchronous>, transform_indices = @transform_3, window_bounds = array<i64: 32, 8>}, {pipeline_mode = #tpu.pipeline_mode<synchronous>, transform_indices = @transform_4, window_bounds = array<i64: 1, 8>}, {pipeline_mode = #tpu.pipeline_mode<synchronous>, transform_indices = @transform_5, window_bounds = array<i64: 32, 8>}, {pipeline_mode = #tpu.pipeline_mode<synchronous>, transform_indices = @transform_6, window_bounds = array<i64: 1, 8>}, {transform_indices = @transform_7, window_bounds = array<i64: 8, 8>}, {transform_indices = @transform_8, window_bounds = array<i64: 8, 8>}, {transform_indices = @transform_9, window_bounds = array<i64: 8, 8>}]} {
    %c0 = arith.constant 0 : index
    %c0_0 = arith.constant 0 : index
    %0 = vector.load %arg1[%c0, %c0_0] : memref<8x16xf32, #tpu.memory_space<vmem>>, vector<8x16xf32>
    %1 = arith.truncf %0 : vector<8x16xf32> to vector<8x16xbf16>
    %c0_1 = arith.constant 0 : index
    %c0_2 = arith.constant 0 : index
    %2 = vector.load %arg2[%c0_1, %c0_2] : memref<16x32xbf16, #tpu.memory_space<vmem>>, vector<16x32xbf16>
    %cst = arith.constant dense<0.000000e+00> : vector<8x32xf32>
    %3 = tpu.matmul %1, %2, %cst {dimension_numbers = #tpu.dot_dimension_numbers<[1], [0], [0], [1], [0, 0, 1, 1], [], []>} : vector<8x16xbf16>, vector<16x32xbf16>, vector<8x32xf32> -> vector<8x32xf32>
    %c0_3 = arith.constant 0 : index
    %c0_4 = arith.constant 0 : index
    %4 = vector.load %arg3[%c0_3, %c0_4] : memref<1x32xf32, #tpu.memory_space<vmem>>, vector<1x32xf32>
    %5 = vector.broadcast %4 : vector<1x32xf32> to vector<8x32xf32>
    %6 = arith.addf %3, %5 : vector<8x32xf32>
    %cst_5 = arith.constant 0.000000e+00 : f32
    %7 = vector.broadcast %cst_5 : f32 to vector<8x32xf32>
    %8 = arith.maximumf %6, %7 : vector<8x32xf32>
    %9 = arith.truncf %8 : vector<8x32xf32> to vector<8x32xbf16>
    %c0_6 = arith.constant 0 : index
    %c0_7 = arith.constant 0 : index
    %10 = vector.load %arg4[%c0_6, %c0_7] : memref<32x8xbf16, #tpu.memory_space<vmem>>, vector<32x8xbf16>
    %cst_8 = arith.constant dense<0.000000e+00> : vector<8x8xf32>
    %11 = tpu.matmul %9, %10, %cst_8 {dimension_numbers = #tpu.dot_dimension_numbers<[1], [0], [0], [1], [0, 0, 1, 1], [], []>} : vector<8x32xbf16>, vector<32x8xbf16>, vector<8x8xf32> -> vector<8x8xf32>
    %c0_9 = arith.constant 0 : index
    %c0_10 = arith.constant 0 : index
    %12 = vector.load %arg5[%c0_9, %c0_10] : memref<1x8xf32, #tpu.memory_space<vmem>>, vector<1x8xf32>
    %13 = vector.broadcast %12 : vector<1x8xf32> to vector<8x8xf32>
    %14 = arith.addf %11, %13 : vector<8x8xf32>
    %c0_11 = arith.constant 0 : index
    %c0_12 = arith.constant 0 : index
    %15 = vector.load %arg6[%c0_11, %c0_12] : memref<32x8xbf16, #tpu.memory_space<vmem>>, vector<32x8xbf16>
    %cst_13 = arith.constant dense<0.000000e+00> : vector<8x8xf32>
    %16 = tpu.matmul %9, %15, %cst_13 {dimension_numbers = #tpu.dot_dimension_numbers<[1], [0], [0], [1], [0, 0, 1, 1], [], []>} : vector<8x32xbf16>, vector<32x8xbf16>, vector<8x8xf32> -> vector<8x8xf32>
    %c0_14 = arith.constant 0 : index
    %c0_15 = arith.constant 0 : index
    %17 = vector.load %arg7[%c0_14, %c0_15] : memref<1x8xf32, #tpu.memory_space<vmem>>, vector<1x8xf32>
    %18 = vector.broadcast %17 : vector<1x8xf32> to vector<8x8xf32>
    %19 = arith.addf %16, %18 : vector<8x8xf32>
    %cst_16 = arith.constant 0.000000e+00 : f32
    %20 = vector.broadcast %cst_16 : f32 to vector<8x8xf32>
    %21 = arith.maximumf %19, %20 : vector<8x8xf32>
    %22 = vector.broadcast %cst_16 : f32 to vector<8x8xf32>
    %23 = arith.subf %19, %22 : vector<8x8xf32>
    %24 = arith.cmpf one, %23, %23 : vector<8x8xf32>
    %25 = vector.broadcast %cst_16 : f32 to vector<8x8xf32>
    %26 = arith.addf %19, %25 : vector<8x8xf32>
    %27 = math.absf %23 : vector<8x8xf32>
    %cst_17 = arith.constant 0.000000e+00 : f32
    %28 = vector.broadcast %cst_17 : f32 to vector<8x8xf32>
    %29 = arith.subf %28, %27 : vector<8x8xf32>
    %30 = math.exp %29 : vector<8x8xf32>
    %31 = math.log1p %30 : vector<8x8xf32>
    %32 = arith.addf %21, %31 : vector<8x8xf32>
    %33 = arith.select %24, %26, %32 : vector<8x8xi1>, vector<8x8xf32>
    %c0_18 = arith.constant 0 : index
    %c0_19 = arith.constant 0 : index
    %34 = vector.load %arg8[%c0_18, %c0_19] : memref<8x8xf32, #tpu.memory_space<vmem>>, vector<8x8xf32>
    %35 = arith.mulf %33, %34 : vector<8x8xf32>
    %36 = arith.addf %14, %35 : vector<8x8xf32>
    %37 = math.tanh %36 : vector<8x8xf32>
    %38 = arith.mulf %34, %34 : vector<8x8xf32>
    %cst_20 = arith.constant -5.000000e-01 : f32
    %39 = vector.broadcast %cst_20 : f32 to vector<8x8xf32>
    %40 = arith.mulf %39, %38 : vector<8x8xf32>
    %41 = math.log %33 : vector<8x8xf32>
    %42 = arith.subf %40, %41 : vector<8x8xf32>
    %cst_21 = arith.constant 0.918938517 : f32
    %43 = vector.broadcast %cst_21 : f32 to vector<8x8xf32>
    %44 = arith.subf %42, %43 : vector<8x8xf32>
    %45 = arith.mulf %37, %37 : vector<8x8xf32>
    %cst_22 = arith.constant 1.000000e+00 : f32
    %46 = vector.broadcast %cst_22 : f32 to vector<8x8xf32>
    %47 = arith.subf %46, %45 : vector<8x8xf32>
    %cst_23 = arith.constant 1.000000e-07 : f32
    %48 = vector.broadcast %cst_23 : f32 to vector<8x8xf32>
    %49 = arith.addf %47, %48 : vector<8x8xf32>
    %50 = math.log %49 : vector<8x8xf32>
    %51 = arith.subf %44, %50 : vector<8x8xf32>
    %cst_24 = arith.constant 2.000000e+00 : f32
    %52 = vector.broadcast %cst_24 : f32 to vector<8x8xf32>
    %53 = arith.mulf %37, %52 : vector<8x8xf32>
    %c0_25 = arith.constant 0 : index
    %c0_26 = arith.constant 0 : index
    %54 = vector.load %arg9[%c0_25, %c0_26] : memref<8x8xf32, #tpu.memory_space<vmem>>, vector<8x8xf32>
    tpu.vector_store %arg9[%c0_25, %c0_26], %53 {strides = array<i32>} : memref<8x8xf32, #tpu.memory_space<vmem>>, vector<8x8xf32>,
    %c0_27 = arith.constant 0 : index
    %c0_28 = arith.constant 0 : index
    %55 = vector.load %arg10[%c0_27, %c0_28] : memref<8x8xf32, #tpu.memory_space<vmem>>, vector<8x8xf32>
    tpu.vector_store %arg10[%c0_27, %c0_28], %51 {strides = array<i32>} : memref<8x8xf32, #tpu.memory_space<vmem>>, vector<8x8xf32>,
    return
  }
  func.func @transform_0(%arg0: i32) -> (i32, i32) {
    %c0_i32 = arith.constant 0 : i32
    %c0_i32_0 = arith.constant 0 : i32
    return %arg0, %c0_i32 : i32, i32
  }
  func.func @transform_1(%arg0: i32) -> (i32, i32) {
    %c0_i32 = arith.constant 0 : i32
    %c0_i32_0 = arith.constant 0 : i32
    %c0_i32_1 = arith.constant 0 : i32
    return %c0_i32, %c0_i32_0 : i32, i32
  }
  func.func @transform_2(%arg0: i32) -> (i32, i32) {
    %c0_i32 = arith.constant 0 : i32
    %c0_i32_0 = arith.constant 0 : i32
    %c0_i32_1 = arith.constant 0 : i32
    return %c0_i32, %c0_i32_0 : i32, i32
  }
  func.func @transform_3(%arg0: i32) -> (i32, i32) {
    %c0_i32 = arith.constant 0 : i32
    %c0_i32_0 = arith.constant 0 : i32
    %c0_i32_1 = arith.constant 0 : i32
    return %c0_i32, %c0_i32_0 : i32, i32
  }
  func.func @transform_4(%arg0: i32) -> (i32, i32) {
    %c0_i32 = arith.constant 0 : i32
    %c0_i32_0 = arith.constant 0 : i32
    %c0_i32_1 = arith.constant 0 : i32
    return %c0_i32, %c0_i32_0 : i32, i32
  }
  func.func @transform_5(%arg0: i32) -> (i32, i32) {
    %c0_i32 = arith.constant 0 : i32
    %c0_i32_0 = arith.constant 0 : i32
    %c0_i32_1 = arith.constant 0 : i32
    return %c0_i32, %c0_i32_0 : i32, i32
  }
  func.func @transform_6(%arg0: i32) -> (i32, i32) {
    %c0_i32 = arith.constant 0 : i32
    %c0_i32_0 = arith.constant 0 : i32
    %c0_i32_1 = arith.constant 0 : i32
    return %c0_i32, %c0_i32_0 : i32, i32
  }
  func.func @transform_7(%arg0: i32) -> (i32, i32) {
    %c0_i32 = arith.constant 0 : i32
    %c0_i32_0 = arith.constant 0 : i32
    return %arg0, %c0_i32 : i32, i32
  }
  func.func @transform_8(%arg0: i32) -> (i32, i32) {
    %c0_i32 = arith.constant 0 : i32
    %c0_i32_0 = arith.constant 0 : i32
    return %arg0, %c0_i32 : i32, i32
  }
  func.func @transform_9(%arg0: i32) -> (i32, i32) {
    %c0_i32 = arith.constant 0 : i32
    %c0_i32_0 = arith.constant 0 : i32
    return %arg0, %c0_i32 : i32, i32
  }
}

</mosaic_0001>

<bundles_post_ra>
// kernel: tpu_custom_call.1
= control target key start
LH: loop header
LB: loop body
LE: loop exit
PB: predicated region body
PF: predicated region fallthrough
CT: control target
= control target key end

     0   :  { %15 = vsyncpa [#allocation3], 0  ;;  %v398_v1 = vmov 0.0   ;;  %vm399_vm0 = vmmov 0   ;;  %vm51_vm1 = vcmask 130048   ;;  %s490_s0 = inlined_call_operand.vmem [shape: f32[8,16], index: 0, kind: input, shape index: {}]   ;;  %s491_s1 = inlined_call_operand.vmem [shape: bf16[16,32], index: 1, kind: input, shape index: {}]   ;;  %s492_s2 = inlined_call_operand.vmem [shape: f32[1,32], index: 2, kind: input, shape index: {}]   ;;  %s493_s3 = inlined_call_operand.vmem [shape: bf16[32,8], index: 3, kind: input, shape index: {}]   ;;  %s494_s4 = inlined_call_operand.vmem [shape: f32[1,8], index: 4, kind: input, shape index: {}]   ;;  %s495_s5 = inlined_call_operand.vmem [shape: bf16[32,8], index: 5, kind: input, shape index: {}]   ;;  %s496_s6 = inlined_call_operand.vmem [shape: f32[1,8], index: 6, kind: input, shape index: {}]   ;;  %s497_s7 = inlined_call_operand.vmem [shape: f32[8,8], index: 7, kind: input, shape index: {}]   ;;  %s498_s8 = inlined_call_operand.hbm [shape: f32[8,8], index: 8, kind: output, shape index: {0}]   ;;  %s499_s9 = inlined_call_operand.hbm [shape: f32[8,8], index: 9, kind: output, shape index: {1}]  }
   0x1   :  { %v339_v0 = vld [vmem:[%s491_s1] sm:$0xff]   ;;  %313 = vmatprep.subr.bf16.mxu0 %v398_v1  ;;  %319 = vmatprep.subr.bf16.mxu1 %v398_v1  ;;  %v340_v4 = vld [vmem:[%s495_s5 + $0x8] sm:$0xff]  }
   0x2   :  { %v34_v2 = vld [vmem:[%s490_s0] sm:$0xff]  ;;  %314 = vmatpush3.bf16.msra.mxu0 %v339_v0  ;;  %315 = vmatprep.mubr.msk.bf16.mxu0 %vm399_vm0, %v398_v1 }
   0x3   :  { %v35_v3 = vpack.c.bf16 %v34_v2, %v34_v2  ;;  %327 = vmatprep.subr.bf16.mxu0 %v398_v1  ;;  %323 = vmatprep.mubr.msk.bf16.mxu1 %vm399_vm0, %v398_v1 }
   0x4   :  { %16 = vsyncpa [#allocation5], 0  ;;  %v341_v5 = vld [vmem:[%s493_s3 + $0x8] sm:$0xff]   ;;  %v342_v6 = vld [vmem:[%s495_s5] sm:$0xff]   ;;  %vm120_vm2 = vcmask 261120   ;;  %s400_s23 = smov [#allocation2]  }
   0x5   :  { %316 = vmatmul.mubr.msk.bf16.vlgmr.msra.gmra.mxu0 %vm51_vm1, %v35_v3  ;;  %320 = vmatpush3.bf16.msra.mxu1 %v341_v5  ;;  %v343_v7 = vld [vmem:[%s493_s3] sm:$0xff]   ;;  %s271_s24 = sshll.u32 %s400_s23, 4  ;;  %vm262_vm5 = vcmask 64512   ;;  %s272_s24 = int_to_ptr.vmem [resolvable:$true] %s271_s24 }
   0x6   :  { %328 = vmatpush3.bf16.msra.mxu0 %v340_v4  ;;  %331 = vmatprep.mubr.msk.bf16.mxu0 %vm399_vm0, %v398_v1  ;;  %v293_v8 = vld [vmem:[%s492_s2] ss:$0 sm:$0xff]  ;;  %p359_p1 = scmp.lt.s32.totalorder %s272_s24, %s272_s24 }
   0x7   :  { %329 = vmatprep.subr.bf16.mxu0 %v398_v1  ;;  %321 = vmatprep.subr.bf16.mxu1 %v398_v1  ;;  %v300_v16 = vld [vmem:[%s496_s6] ss:$0 sm:$0xff] }
   0x8   :  { %v296_v39 = vld [vmem:[%s494_s4] ss:$0 sm:$0xff]  ;;  %s354_s4 = scalar_lea.vmem %s272_s24, 128 }
   0x9   :  { %322 = vmatpush3.bf16.msra.mxu1 %v343_v7  ;;  %v245_v41 = vld [vmem:[%s497_s7] sm:$0xff]  ;;  %p355_p0 = scmp.ne.s32.totalorder %s272_s24, %s354_s4  ;;  %p360_p2 = scmp.lt.s32.totalorder %s354_s4, %s354_s4 }
   0xa   :  { %330 = vmatpush3.bf16.msra.mxu0 %v342_v6 }
   0xb   :  { %p361_p3 = por %p360_p2, %p359_p1 }
   0xd   :  { %p362_p4 = pnand %p361_p3, %p355_p0 }
  0xc5   :  { %v89_v9 = vpop.f32.mrf.mxu0 }
  0xc6   :  { %v90_v10 = vadd.f32 %v293_v8, %v89_v9 }
  0xc7   :  { %v317_v11 = vpop.f32.mrf.mxu0 }
  0xc8   :  { %v95_v12 = vmax.f32 %v90_v10, 0.0 }
  0xc9   :  { %v92_v13 = vpop.f32.mrf.mxu0 }
  0xca   :  { %v96_v14 = vpack.c.bf16 %v95_v12, %v95_v12 }
  0xcb   :  { %v318_v15 = vpop.f32.mrf.mxu0 }
  0xcc   :  { %324 = vmatmul.mubr.msk.bf16.vlgmr.msra.gmra.mxu1 %vm120_vm2, %v96_v14  ;;  %332 = vmatmul.mubr.msk.bf16.vlgmr.msra.gmra.mxu0 %vm120_vm2, %v96_v14 }
 0x18c   :  { %v158_v17 = vpop.f32.mrf.mxu1  ;;  %v221_v18 = vpop.f32.mrf.mxu0 }
 0x18d   :  { %v222_v19 = vadd.f32 %v300_v16, %v221_v18  ;;  %v159_v43 = vadd.f32 %v296_v39, %v158_v17 }
 0x18e   :  { %v325_v20 = vpop.f32.mrf.mxu1  ;;  %v333_v21 = vpop.f32.mrf.mxu0 }
 0x18f   :  { %v230_v22 = vand.u32 2147483647, %v222_v19  ;;  %v227_v37 = vmax.f32 %v222_v19, 0.0  ;;  %vm228_vm4 = vcmp.ne.f32.partialorder %v222_v19, %v222_v19 }
 0x190   :  { %v161_v23 = vpop.f32.mrf.mxu1  ;;  %v224_v24 = vpop.f32.mrf.mxu0 }
 0x191   :  { %v231_v25 = vsub.f32 0.0, %v230_v22 }
 0x192   :  { %v326_v26 = vpop.f32.mrf.mxu1  ;;  %v334_v27 = vpop.f32.mrf.mxu0 }
 0x193   :  { %v232_v28 = vmul.f32 1.442695, %v231_v25 }
 0x195   :  { %344 = vpow2.f32 %v232_v28 }
 0x1a2   :  { %v345_v29 = vpop.eup %344 }
 0x1a3   :  { %v234_v30 = vadd.f32 1.0, %v345_v29  ;;  %v237_v31 = vmul.f32 -0.5, %v345_v29  ;;  %v240_v33 = vand.u32 2147483647, %v345_v29 }
 0x1a5   :  { %346 = vlog2.f32 %v234_v30  ;;  %v238_v32 = vadd.f32 1.0, %v237_v31  ;;  %vm241_vm3 = vcmp.lt.f32.partialorder %v240_v33, 0.0004427343 }
 0x1a7   :  { %v239_v36 = vmul.f32 %v345_v29, %v238_v32 }
 0x1b2   :  { %v347_v34 = vpop.eup %346 }
 0x1b3   :  { %v236_v35 = vmul.f32 0.6931472, %v347_v34 }
 0x1b5   :  { %v242_v38 = vsel %vm241_vm3, %v239_v36, %v236_v35 }
 0x1b6   :  { %v243_v40 = vadd.f32 %v242_v38, %v227_v37 }
 0x1b8   :  { %v244_v42 = vsel %vm228_vm4, %v222_v19, %v243_v40 }
 0x1b9   :  { %v246_v44 = vmul.f32 %v245_v41, %v244_v42 }
 0x1bb   :  { %v247_v45 = vadd.f32 %v246_v44, %v159_v43 }
 0x1bd   :  { %348 = vtanh.f32 %v247_v45 }
 0x1be   :  { %350 = vlog2.f32 %v244_v42 }
 0x1ca   :  { %v349_v46 = vpop.eup %348 }
 0x1cb   :  { %v261_v47 = vmul.f32 2.0, %v349_v46  ;;  %v255_v48 = vmul.f32 %v349_v46, %v349_v46 }
 0x1cd   :  { %263 = vst.msk [vmem:[#allocation2] sm:$0xff] %vm262_vm5, %v261_v47  ;;  %v256_v49 = vsub.f32 1.0, %v255_v48 }
 0x1ce   :  { %365 = shalt.err (!%p362_p4)
}
 0x1cf   :  { %274 = dma.vmem_to_hbm [thread:$0]  %s272_s24, 128, %s498_s8, [#allocation3]   ;;  %v257_v50 = vadd.f32 1e-07, %v256_v49  ;;  %v249_v51 = vmul.f32 %v245_v41, %v245_v41  ;;  %v351_v52 = vpop.eup %350 }
 0x1d0   :  { %v252_v54 = vmul.f32 0.6931472, %v351_v52  ;;  %s401_s26 = smov [#allocation4]  }
 0x1d1   :  { %352 = vlog2.f32 %v257_v50  ;;  %v250_v53 = vmul.f32 -0.5, %v249_v51  ;;  %s281_s27 = sshll.u32 %s401_s26, 4  ;;  %s282_s27 = int_to_ptr.vmem [resolvable:$true] %s281_s27 }
 0x1d2   :  { %s374_s28 = scalar_lea.vmem %s282_s27, 128  ;;  %p379_p6 = scmp.lt.s32.totalorder %s282_s27, %s282_s27 }
 0x1d3   :  { %v253_v55 = vsub.f32 %v250_v53, %v252_v54  ;;  %p375_p5 = scmp.ne.s32.totalorder %s282_s27, %s374_s28  ;;  %p380_p7 = scmp.lt.s32.totalorder %s374_s28, %s374_s28 }
 0x1d5   :  { %v304_v57 = vadd.f32 -0.9189385, %v253_v55  ;;  %p381_p8 = por %p380_p7, %p379_p6 }
 0x1d7   :  { %p382_p9 = pnand %p381_p8, %p375_p5 }
 0x1de   :  { %v353_v56 = vpop.eup %352 }
 0x1df   :  { %v259_v58 = vmul.f32 0.6931472, %v353_v56 }
 0x1e1   :  { %v260_v59 = vsub.f32 %v304_v57, %v259_v58 }
 0x1e3   :  { %264 = vst.msk [vmem:[#allocation4] sm:$0xff] %vm262_vm5, %v260_v59 }
 0x1e4   :  { %385 = shalt.err (!%p382_p9)
}
 0x1e5   :  { %284 = dma.vmem_to_hbm [thread:$0]  %s282_s27, 128, %s499_s9, [#allocation5]  }
 0x1e6   :  { %394 = dma.done.wait [#allocation3], 128  }
 0x1e7   :  { %395 = vsyncadd [#allocation3], 4294967168 }
 0x1e8   :  { %396 = dma.done.wait [#allocation5], 128  }
 0x1e9   :  { %397 = vsyncadd [#allocation5], 4294967168 }
 0x1ea   :  { %291 = vsyncpa [#allocation3], 1 }
 0x1eb   :  { %292 = vsyncpa [#allocation5], 1 }

</bundles_post_ra>
